<compile_context>
chip_gen: v7x
topology: tpu7x:2x2x1
jax: 0.10.0
libtpu: 0.0.40
codegen_flags: <defaults>
</compile_context>

<pallas_src>
import jax
import jax.numpy as jnp
from jax.experimental import pallas as pl
from jax.experimental.pallas import tpu as pltpu

_LANE = 128


def _dice4mots_partial_kernel(pred_ref, targ_ref, num_ref, psum_ref, tsum_ref):
    x = pred_ref[...].astype(jnp.float32)            # (NC, rows_tile, 128)
    t = targ_ref[...].astype(jnp.float32)
    # sigmoid via EUP exp + exact reciprocal (pad value -1e30 maps to exactly 0)
    p = pl.reciprocal(1.0 + jnp.exp(-x))
    # Reduce only the row axis of this chunk; lane + chunk reduction happens in
    # the (tiny) JAX finalize so the output stays lane-dense (128 wide).
    num_ref[0] = jnp.sum(p * t, axis=1)              # (NC, 128)
    psum_ref[0] = jnp.sum(p, axis=1)
    tsum_ref[0] = jnp.sum(t, axis=1)


def dice_loss_4mots(predict, target, *, num_classes=3, ignore_index=None,
                    smooth=1.0, target_block_bytes=2 * 1024 * 1024):
    # TODO(synk): the `weight` path of the PyTorch module is not implemented
    # (default weight=None; the original code references a nonexistent
    # `self.weights`, i.e. it is dead/buggy code).
    N, C, H, W = predict.shape
    assert C == num_classes
    S = H * W
    NC = N * C

    # -1 sentinel source: first flattened element of every (n, c) plane.
    tfirst = target[:, :, 0, 0].astype(jnp.float32)                  # (N, C)

    # Free reshape (no transpose): (N, C, H, W) -> (N*C, S)
    p2 = predict.reshape(NC, S)
    t2 = target.reshape(NC, S)

    # Row tiling: R rows of 128 lanes per plane; rows_tile ~ 2 MiB input block.
    R = -(-S // _LANE)
    desired = max(8, (target_block_bytes // (NC * _LANE * 4)) // 8 * 8)
    if R <= desired:
        rows_tile = R
        R_pad = R
    else:
        rows_tile = desired
        R_pad = -(-R // rows_tile) * rows_tile
    pad = R_pad * _LANE - S
    if pad:
        # sigmoid(-1e30) == 0 exactly; target pad 0 -> all sums unchanged.
        p2 = jnp.pad(p2, ((0, 0), (0, pad)), constant_values=-1e30)
        t2 = jnp.pad(t2, ((0, 0), (0, pad)), constant_values=0.0)
    p3 = p2.reshape(NC, R_pad, _LANE)
    t3 = t2.reshape(NC, R_pad, _LANE)
    num_chunks = R_pad // rows_tile

    elems = NC * R_pad * _LANE
    cost = pl.CostEstimate(
        flops=8 * elems,
        transcendentals=elems,
        bytes_accessed=(p3.dtype.itemsize + t3.dtype.itemsize) * elems
        + 3 * num_chunks * NC * _LANE * 4,
    )

    part_shape = jax.ShapeDtypeStruct((num_chunks, NC, _LANE), jnp.float32)
    part_spec = pl.BlockSpec((1, NC, _LANE), lambda c: (c, 0, 0))

    num_p, psum_p, tsum_p = pl.pallas_call(
        _dice4mots_partial_kernel,
        out_shape=(part_shape, part_shape, part_shape),
        grid=(num_chunks,),
        in_specs=[
            pl.BlockSpec((NC, rows_tile, _LANE), lambda c: (0, c, 0)),
            pl.BlockSpec((NC, rows_tile, _LANE), lambda c: (0, c, 0)),
        ],
        out_specs=(part_spec, part_spec, part_spec),
        compiler_params=pltpu.CompilerParams(
            dimension_semantics=("parallel",)),
        cost_estimate=cost,
    )(p3, t3)

    # ---- tiny finalize on (N, C) scalars (plain JAX) ----
    num = jnp.sum(num_p, axis=(0, 2)).reshape(N, C)
    psum = jnp.sum(psum_p, axis=(0, 2)).reshape(N, C)
    tsum = jnp.sum(tsum_p, axis=(0, 2)).reshape(N, C)

    den = psum + tsum + smooth
    dice = 1.0 - 2.0 * num / den                                    # (N, C)
    valid = tfirst != -1.0                                          # (N, C)
    cnt = jnp.sum(valid.astype(jnp.float32), axis=0)                # (C,)
    cls_loss = jnp.sum(jnp.where(valid, dice, 0.0), axis=0) / cnt   # (C,) NaN if cnt==0

    keep = cls_loss == cls_loss                                     # NaN filter
    if ignore_index is not None and 0 <= ignore_index < C:
        keep = keep & (jnp.arange(C) != ignore_index)
    n_keep = jnp.sum(keep.astype(jnp.float32))
    total = jnp.sum(jnp.where(keep, cls_loss, 0.0))
    return total / n_keep


def reference_loss(predict, target, *, num_classes, ignore_index, smooth):
    """Pure-JAX reference mirroring the PyTorch module."""
    p = jax.nn.sigmoid(predict.astype(jnp.float32))
    t = target.astype(jnp.float32)
    losses = []
    for i in range(num_classes):
        if i == ignore_index:
            continue
        pi = p[:, i].reshape(p.shape[0], -1)
        ti = t[:, i].reshape(t.shape[0], -1)
        num = jnp.sum(pi * ti, axis=1)
        den = jnp.sum(pi, axis=1) + jnp.sum(ti, axis=1) + smooth
        dl = 1.0 - 2.0 * num / den
        m = ti[:, 0] != -1
        losses.append(jnp.sum(jnp.where(m, dl, 0.0)) / jnp.sum(m))
    tl = jnp.stack(losses)
    keep = tl == tl
    return jnp.sum(jnp.where(keep, tl, 0.0)) / jnp.sum(keep)


if __name__ == "__main__":
    key = jax.random.PRNGKey(0)
    k1, k2, k3, k4 = jax.random.split(key, 4)
    N, C, H, W = 2, 3, 16, 16
    predict = jax.random.normal(k1, (N, C, H, W), dtype=jnp.float32)
    target = (jax.random.uniform(k2, (N, C, H, W)) > 0.5).astype(jnp.float32)
    # mark one (batch, class) plane as "missing" via the -1 sentinel
    target = target.at[1, 2, 0, 0].set(-1.0)

    loss = dice_loss_4mots(predict, target, num_classes=C, ignore_index=None, smooth=1.0)
    loss = jax.block_until_ready(loss)
    ref = reference_loss(predict, target, num_classes=C, ignore_index=None, smooth=1.0)
    assert jnp.allclose(loss, ref, atol=1e-5, rtol=1e-5), (loss, ref)

    # second check: spatial size not a multiple of 128 exercises the pad path
    H2, W2 = 10, 10
    predict2 = jax.random.normal(k3, (N, C, H2, W2), dtype=jnp.float32)
    target2 = (jax.random.uniform(k4, (N, C, H2, W2)) > 0.5).astype(jnp.float32)
    target2 = target2.at[0, 1, 0, 0].set(-1.0)
    loss2 = dice_loss_4mots(predict2, target2, num_classes=C, ignore_index=None, smooth=1.0)
    loss2 = jax.block_until_ready(loss2)
    ref2 = reference_loss(predict2, target2, num_classes=C, ignore_index=None, smooth=1.0)
    assert jnp.allclose(loss2, ref2, atol=1e-5, rtol=1e-5), (loss2, ref2)

    print("KERNEL_OK")
</pallas_src>

<mosaic_0001>
module attributes {stable_mosaic.version = 11 : i64} {
  func.func @_dice4mots_partial_kernel(%arg0: i32, %arg1: memref<6x2x128xf32, #tpu.memory_space<vmem>>, %arg2: memref<6x2x128xf32, #tpu.memory_space<vmem>>, %arg3: memref<1x6x128xf32, #tpu.memory_space<vmem>>, %arg4: memref<1x6x128xf32, #tpu.memory_space<vmem>>, %arg5: memref<1x6x128xf32, #tpu.memory_space<vmem>>) attributes {dimension_semantics = [#tpu.dimension_semantics<parallel>], iteration_bounds = array<i64: 1>, scalar_prefetch = 0 : i64, scratch_operands = 0 : i64, tpu.core_type = #tpu.core_type<tc>, window_params = [{transform_indices = @transform_0, window_bounds = array<i64: 6, 2, 128>}, {transform_indices = @transform_1, window_bounds = array<i64: 6, 2, 128>}, {transform_indices = @transform_2, window_bounds = array<i64: 1, 6, 128>}, {transform_indices = @transform_3, window_bounds = array<i64: 1, 6, 128>}, {transform_indices = @transform_4, window_bounds = array<i64: 1, 6, 128>}]} {
    %c0 = arith.constant 0 : index
    %c0_0 = arith.constant 0 : index
    %c0_1 = arith.constant 0 : index
    %0 = vector.load %arg1[%c0, %c0_0, %c0_1] : memref<6x2x128xf32, #tpu.memory_space<vmem>>, vector<6x2x128xf32>
    %c0_2 = arith.constant 0 : index
    %c0_3 = arith.constant 0 : index
    %c0_4 = arith.constant 0 : index
    %1 = vector.load %arg2[%c0_2, %c0_3, %c0_4] : memref<6x2x128xf32, #tpu.memory_space<vmem>>, vector<6x2x128xf32>
    %cst = arith.constant 0.000000e+00 : f32
    %2 = vector.broadcast %cst : f32 to vector<6x2x128xf32>
    %3 = arith.subf %2, %0 : vector<6x2x128xf32>
    %4 = math.exp %3 : vector<6x2x128xf32>
    %cst_5 = arith.constant 1.000000e+00 : f32
    %5 = vector.broadcast %cst_5 : f32 to vector<6x2x128xf32>
    %6 = arith.addf %5, %4 : vector<6x2x128xf32>
    %7 = tpu.reciprocal %6 : vector<6x2x128xf32> -> vector<6x2x128xf32>
    %8 = arith.mulf %7, %1 : vector<6x2x128xf32>
    %cst_6 = arith.constant dense<0.000000e+00> : vector<6x128xf32>
    %9 = vector.multi_reduction <add>, %8, %cst_6 [1] : vector<6x2x128xf32> to vector<6x128xf32>
    %c0_7 = arith.constant 0 : index
    %c0_8 = arith.constant 0 : index
    %c0_9 = arith.constant 0 : index
    %10 = vector.load %arg3[%c0_7, %c0_8, %c0_9] : memref<1x6x128xf32, #tpu.memory_space<vmem>>, vector<1x6x128xf32>
    %11 = vector.shape_cast %10 : vector<1x6x128xf32> to vector<6x128xf32>
    %12 = vector.shape_cast %9 : vector<6x128xf32> to vector<1x6x128xf32>
    tpu.vector_store %arg3[%c0_7, %c0_8, %c0_9], %12 {strides = array<i32>} : memref<1x6x128xf32, #tpu.memory_space<vmem>>, vector<1x6x128xf32>,
    %cst_10 = arith.constant dense<0.000000e+00> : vector<6x128xf32>
    %13 = vector.multi_reduction <add>, %7, %cst_10 [1] : vector<6x2x128xf32> to vector<6x128xf32>
    %c0_11 = arith.constant 0 : index
    %c0_12 = arith.constant 0 : index
    %c0_13 = arith.constant 0 : index
    %14 = vector.load %arg4[%c0_11, %c0_12, %c0_13] : memref<1x6x128xf32, #tpu.memory_space<vmem>>, vector<1x6x128xf32>
    %15 = vector.shape_cast %14 : vector<1x6x128xf32> to vector<6x128xf32>
    %16 = vector.shape_cast %13 : vector<6x128xf32> to vector<1x6x128xf32>
    tpu.vector_store %arg4[%c0_11, %c0_12, %c0_13], %16 {strides = array<i32>} : memref<1x6x128xf32, #tpu.memory_space<vmem>>, vector<1x6x128xf32>,
    %cst_14 = arith.constant dense<0.000000e+00> : vector<6x128xf32>
    %17 = vector.multi_reduction <add>, %1, %cst_14 [1] : vector<6x2x128xf32> to vector<6x128xf32>
    %c0_15 = arith.constant 0 : index
    %c0_16 = arith.constant 0 : index
    %c0_17 = arith.constant 0 : index
    %18 = vector.load %arg5[%c0_15, %c0_16, %c0_17] : memref<1x6x128xf32, #tpu.memory_space<vmem>>, vector<1x6x128xf32>
    %19 = vector.shape_cast %18 : vector<1x6x128xf32> to vector<6x128xf32>
    %20 = vector.shape_cast %17 : vector<6x128xf32> to vector<1x6x128xf32>
    tpu.vector_store %arg5[%c0_15, %c0_16, %c0_17], %20 {strides = array<i32>} : memref<1x6x128xf32, #tpu.memory_space<vmem>>, vector<1x6x128xf32>,
    return
  }
  func.func @transform_0(%arg0: i32) -> (i32, i32, i32) {
    %c0_i32 = arith.constant 0 : i32
    %c0_i32_0 = arith.constant 0 : i32
    %c0_i32_1 = arith.constant 0 : i32
    return %c0_i32, %arg0, %c0_i32_0 : i32, i32, i32
  }
  func.func @transform_1(%arg0: i32) -> (i32, i32, i32) {
    %c0_i32 = arith.constant 0 : i32
    %c0_i32_0 = arith.constant 0 : i32
    %c0_i32_1 = arith.constant 0 : i32
    return %c0_i32, %arg0, %c0_i32_0 : i32, i32, i32
  }
  func.func @transform_2(%arg0: i32) -> (i32, i32, i32) {
    %c0_i32 = arith.constant 0 : i32
    %c0_i32_0 = arith.constant 0 : i32
    %c0_i32_1 = arith.constant 0 : i32
    return %arg0, %c0_i32, %c0_i32_0 : i32, i32, i32
  }
  func.func @transform_3(%arg0: i32) -> (i32, i32, i32) {
    %c0_i32 = arith.constant 0 : i32
    %c0_i32_0 = arith.constant 0 : i32
    %c0_i32_1 = arith.constant 0 : i32
    return %arg0, %c0_i32, %c0_i32_0 : i32, i32, i32
  }
  func.func @transform_4(%arg0: i32) -> (i32, i32, i32) {
    %c0_i32 = arith.constant 0 : i32
    %c0_i32_0 = arith.constant 0 : i32
    %c0_i32_1 = arith.constant 0 : i32
    return %arg0, %c0_i32, %c0_i32_0 : i32, i32, i32
  }
}

</mosaic_0001>

<bundles_post_ra>
// kernel: tpu_custom_call.1
= control target key start
LH: loop header
LB: loop body
LE: loop exit
PB: predicated region body
PF: predicated region fallthrough
CT: control target
= control target key end

     0   :  { %10 = vsyncpa [#allocation3], 0  ;;  %s474_s0 = inlined_call_operand.hbm [shape: f32[6,2,128], index: 0, kind: input, shape index: {}]   ;;  %s475_s1 = inlined_call_operand.hbm [shape: f32[6,2,128], index: 1, kind: input, shape index: {}]   ;;  %s476_s2 = inlined_call_operand.vmem [shape: f32[1,6,128], index: 2, kind: output, shape index: {0}]   ;;  %s477_s3 = inlined_call_operand.vmem [shape: f32[1,6,128], index: 3, kind: output, shape index: {1}]   ;;  %s478_s4 = inlined_call_operand.vmem [shape: f32[1,6,128], index: 4, kind: output, shape index: {2}]  }
   0x1   :  { %11 = vsyncpa [#allocation5], 0  ;;  %s351_s15 = smov [#allocation2]   ;;  %s303_s19 = scalar_lea.hbm %s474_s0, 192 }
   0x2   :  { %s17_s16 = sshll.u32 %s351_s15, 4  ;;  %p304_p0 = scmp.ne.s32.totalorder %s474_s0, %s303_s19  ;;  %s18_s16 = int_to_ptr.vmem [resolvable:$true] %s17_s16 }
   0x3   :  { %p307_p1 = scmp.lt.u32.totalorder %s303_s19, %s474_s0 }
   0x5   :  { %p309_p2 = pnand %p307_p1, %p304_p0 }
   0x7   :  { %312 = shalt.err (!%p309_p2)
}
   0x8   :  { %s313_s24 = scalar_lea.vmem %s18_s16, 192  ;;  %p318_p4 = scmp.lt.s32.totalorder %s18_s16, %s18_s16 }
   0x9   :  { %p314_p3 = scmp.ne.s32.totalorder %s18_s16, %s313_s24  ;;  %p319_p5 = scmp.lt.s32.totalorder %s313_s24, %s313_s24 }
   0xb   :  { %p320_p6 = por %p319_p5, %p318_p4 }
   0xd   :  { %p321_p7 = pnand %p320_p6, %p314_p3 }
   0xf   :  { %324 = shalt.err (!%p321_p7)
}
  0x10   :  { %s352_s25 = smov 32   ;;  %s353_s26 = smov 2  }
  0x11   :  { %23 = dma.hbm_to_vmem [thread:$0]  %s474_s0, 192, %s18_s16, [#allocation3], %s352_s25, %s352_s25, %s353_s26  }
  0x12   :  { %s354_s29 = smov [#allocation4]   ;;  %s325_s7 = scalar_lea.hbm %s475_s1, 192 }
  0x13   :  { %s29_s30 = sshll.u32 %s354_s29, 4  ;;  %p326_p8 = scmp.ne.s32.totalorder %s475_s1, %s325_s7  ;;  %s30_s30 = int_to_ptr.vmem [resolvable:$true] %s29_s30 }
  0x14   :  { %p329_p9 = scmp.lt.u32.totalorder %s325_s7, %s475_s1 }
  0x16   :  { %p331_p10 = pnand %p329_p9, %p326_p8 }
  0x18   :  { %334 = shalt.err (!%p331_p10)
}
  0x19   :  { %s335_s12 = scalar_lea.vmem %s30_s30, 192  ;;  %p340_p12 = scmp.lt.s32.totalorder %s30_s30, %s30_s30 }
  0x1a   :  { %p336_p11 = scmp.ne.s32.totalorder %s30_s30, %s335_s12  ;;  %p341_p13 = scmp.lt.s32.totalorder %s335_s12, %s335_s12 }
  0x1c   :  { %p342_p0 = por %p341_p13, %p340_p12 }
  0x1e   :  { %p343_p1 = pnand %p342_p0, %p336_p11 }
  0x20   :  { %346 = shalt.err (!%p343_p1)
}
  0x21   :  { %35 = dma.hbm_to_vmem [thread:$0]  %s475_s1, 192, %s30_s30, [#allocation5], %s352_s25, %s352_s25, %s353_s26  }
  0x22   :  { %347 = dma.done.wait [#allocation3], 192  }
  0x23   :  { %348 = vsyncadd [#allocation3], 4294967104 }
  0x24   :  { %349 = dma.done.wait [#allocation5], 192  }
  0x25   :  { %350 = vsyncadd [#allocation5], 4294967104  ;;  %v42_v0 = vld [vmem:[#allocation2] sm:$0x3]  ;;  %v43_v1 = vld [vmem:[#allocation2 + $0x2] sm:$0x3] }
  0x26   :  { %v44_v2 = vld [vmem:[#allocation2 + $0x4] sm:$0x3]  ;;  %v45_v3 = vld [vmem:[#allocation2 + $0x6] sm:$0x3]  ;;  %v46_v4 = vld [vmem:[#allocation2 + $0x8] sm:$0x3] }
  0x27   :  { %v47_v5 = vld [vmem:[#allocation2 + $0xa] sm:$0x3]  ;;  %vm90_vm0 = vcmask 1041408   ;;  %v404_v6 = vld [vmem:[#allocation4] sm:$0x3]  ;;  %v54_v8 = vsub.f32 0.0, %v42_v0 }
  0x28   :  { %v406_v7 = vld [vmem:[#allocation4 + $0x2] sm:$0x3]  ;;  %v55_v9 = vsub.f32 0.0, %v43_v1  ;;  %v56_v10 = vsub.f32 0.0, %v44_v2  ;;  %v57_v11 = vsub.f32 0.0, %v45_v3  ;;  %v58_v13 = vsub.f32 0.0, %v46_v4 }
  0x29   :  { %v408_v12 = vld [vmem:[#allocation4 + $0x4] sm:$0x3]  ;;  %v59_v14 = vsub.f32 0.0, %v47_v5  ;;  %v206_v15 = vsel %vm90_vm0, %v404_v6, 0.0  ;;  %v213_v16 = vsel %vm90_vm0, %v406_v7, 0.0  ;;  %vm139_vm1 = vcmask 1041409  }
  0x2a   :  { %v414_v17 = vld [vmem:[#allocation4 + $0x6] sm:$0x3]  ;;  %v60_v18 = vmul.f32 1.442695, %v54_v8  ;;  %v62_v19 = vmul.f32 1.442695, %v55_v9 }
  0x2b   :  { %v64_v20 = vmul.f32 1.442695, %v56_v10  ;;  %v66_v21 = vmul.f32 1.442695, %v57_v11  ;;  %v68_v22 = vmul.f32 1.442695, %v58_v13 }
  0x2c   :  { %v70_v23 = vmul.f32 1.442695, %v59_v14  ;;  %v416_v24 = vld [vmem:[#allocation4 + $0x8] sm:$0x3]  ;;  %279 = vpow2.f32 %v60_v18  ;;  %v207_v25 = vrot.slane %v206_v15, 4  ;;  %v214_v26 = vrot.slane %v213_v16, 4 }
  0x2d   :  { %v220_v27 = vsel %vm90_vm0, %v408_v12, 0.0  ;;  %281 = vpow2.f32 %v62_v19  ;;  %v227_v29 = vsel %vm90_vm0, %v414_v17, 0.0  ;;  %v234_v30 = vsel %vm90_vm0, %v416_v24, 0.0  ;;  %v424_v31 = vld [vmem:[#allocation4 + $0xa] sm:$0x3] }
  0x2e   :  { %v221_v28 = vrot.slane %v220_v27, 4  ;;  %283 = vpow2.f32 %v64_v20  ;;  %v208_v32 = vadd.f32 %v207_v25, %v206_v15  ;;  %v215_v33 = vadd.f32 %v214_v26, %v213_v16 }
  0x2f   :  { %v228_v34 = vrot.slane %v227_v29, 4  ;;  %285 = vpow2.f32 %v66_v21  ;;  %v235_v36 = vrot.slane %v234_v30, 4  ;;  %v241_v37 = vsel %vm90_vm0, %v424_v31, 0.0 }
  0x30   :  { %v222_v35 = vadd.f32 %v221_v28, %v220_v27  ;;  %287 = vpow2.f32 %v68_v22  ;;  %v209_v38 = vrot.slane %v208_v32, 2  ;;  %v216_v39 = vrot.slane %v215_v33, 2 }
  0x31   :  { %v229_v40 = vadd.f32 %v228_v34, %v227_v29  ;;  %289 = vpow2.f32 %v70_v23  ;;  %v236_v42 = vadd.f32 %v235_v36, %v234_v30  ;;  %v242_v43 = vrot.slane %v241_v37, 4 }
  0x32   :  { %v223_v41 = vrot.slane %v222_v35, 2  ;;  %v210_v44 = vadd.f32 %v209_v38, %v208_v32  ;;  %v217_v45 = vadd.f32 %v216_v39, %v215_v33  ;;  %vm141_vm2 = vcmask 1042434  }
  0x33   :  { %v230_v46 = vrot.slane %v229_v40, 2  ;;  %v237_v48 = vrot.slane %v236_v42, 2  ;;  %v243_v49 = vadd.f32 %v242_v43, %v241_v37  ;;  %vm143_vm3 = vcmask 1043459  }
  0x34   :  { %v224_v47 = vadd.f32 %v223_v41, %v222_v35  ;;  %v211_v50 = vrot.slane %v210_v44, 1  ;;  %v218_v51 = vrot.slane %v217_v45, 1  ;;  %vm145_vm4 = vcmask 1044484  }
  0x35   :  { %v231_v52 = vadd.f32 %v230_v46, %v229_v40  ;;  %v238_v54 = vadd.f32 %v237_v48, %v236_v42  ;;  %v244_v55 = vrot.slane %v243_v49, 2  ;;  %vm147_vm5 = vcmask 1045509  }
  0x36   :  { %v225_v53 = vrot.slane %v224_v47, 1  ;;  %v280_v56 = vpop.eup %279  ;;  %v212_v57 = vadd.f32 %v211_v50, %v210_v44  ;;  %v219_v58 = vadd.f32 %v218_v51, %v217_v45 }
  0x37   :  { %v232_v59 = vrot.slane %v231_v52, 1  ;;  %v282_v60 = vpop.eup %281  ;;  %v72_v61 = vadd.f32 1.0, %v280_v56  ;;  %v239_v63 = vrot.slane %v238_v54, 1  ;;  %v245_v0 = vadd.f32 %v244_v55, %v243_v49 }
  0x38   :  { %v226_v62 = vadd.f32 %v225_v53, %v224_v47  ;;  %v284_v1 = vpop.eup %283  ;;  %v73_v2 = vadd.f32 1.0, %v282_v60  ;;  %v254_v4 = vsel %vm139_vm1, %v219_v58, %v212_v57 }
  0x39   :  { %v233_v3 = vadd.f32 %v232_v59, %v231_v52  ;;  %v286_v5 = vpop.eup %285  ;;  %v74_v8 = vadd.f32 1.0, %v284_v1  ;;  %291 = vrcp.f32 %v72_v61  ;;  %v240_v9 = vadd.f32 %v239_v63, %v238_v54 }
  0x3a   :  { %v246_v10 = vrot.slane %v245_v0, 1  ;;  %v288_v11 = vpop.eup %287  ;;  %v75_v13 = vadd.f32 1.0, %v286_v5  ;;  %293 = vrcp.f32 %v73_v2  ;;  %v255_v14 = vsel %vm141_vm2, %v226_v62, %v254_v4 }
  0x3b   :  { %v290_v15 = vpop.eup %289  ;;  %v76_v16 = vadd.f32 1.0, %v288_v11  ;;  %295 = vrcp.f32 %v74_v8  ;;  %v256_v19 = vsel %vm143_vm3, %v233_v3, %v255_v14 }
  0x3c   :  { %v247_v18 = vadd.f32 %v246_v10, %v245_v0  ;;  %v77_v20 = vadd.f32 1.0, %v290_v15  ;;  %297 = vrcp.f32 %v75_v13  ;;  %v257_v21 = vsel %vm145_vm4, %v240_v9, %v256_v19 }
  0x3d   :  { %299 = vrcp.f32 %v76_v16 }
  0x3e   :  { %v258_v22 = vsel %vm147_vm5, %v247_v18, %v257_v21  ;;  %301 = vrcp.f32 %v77_v20 }
  0x3f   :  { %260 = vst [vmem:[%s478_s4] sm:$0x3f] %v258_v22 }
  0x43   :  { %v292_v23 = vpop.eup %291 }
  0x44   :  { %v294_v25 = vpop.eup %293  ;;  %v84_v26 = vmul.f32 %v292_v23, %v404_v6  ;;  %v151_v27 = vsel %vm90_vm0, %v292_v23, 0.0 }
  0x45   :  { %v296_v28 = vpop.eup %295  ;;  %v85_v29 = vmul.f32 %v294_v25, %v406_v7  ;;  %v152_v30 = vrot.slane %v151_v27, 4  ;;  %v158_v32 = vsel %vm90_vm0, %v294_v25, 0.0 }
  0x46   :  { %v298_v33 = vpop.eup %297  ;;  %v86_v34 = vmul.f32 %v296_v28, %v408_v12  ;;  %v91_v35 = vsel %vm90_vm0, %v84_v26, 0.0  ;;  %v159_v36 = vrot.slane %v158_v32, 4  ;;  %v165_v37 = vsel %vm90_vm0, %v296_v28, 0.0 }
  0x47   :  { %v300_v38 = vpop.eup %299  ;;  %v87_v39 = vmul.f32 %v298_v33, %v414_v17  ;;  %v92_v6 = vrot.slane %v91_v35, 4  ;;  %v98_v40 = vsel %vm90_vm0, %v85_v29, 0.0  ;;  %v153_v41 = vadd.f32 %v152_v30, %v151_v27 }
  0x48   :  { %v445_v42 = vpop.eup %301  ;;  %v88_v7 = vmul.f32 %v300_v38, %v416_v24  ;;  %v99_v43 = vrot.slane %v98_v40, 4  ;;  %v105_v44 = vsel %vm90_vm0, %v86_v34, 0.0  ;;  %v160_v12 = vadd.f32 %v159_v36, %v158_v32 }
  0x49   :  { %v89_v45 = vmul.f32 %v445_v42, %v424_v31  ;;  %v93_v46 = vadd.f32 %v92_v6, %v91_v35  ;;  %v106_v47 = vrot.slane %v105_v44, 4  ;;  %v112_v48 = vsel %vm90_vm0, %v87_v39, 0.0 }
  0x4a   :  { %v100_v17 = vadd.f32 %v99_v43, %v98_v40  ;;  %v113_v49 = vrot.slane %v112_v48, 4  ;;  %v119_v50 = vsel %vm90_vm0, %v88_v7, 0.0  ;;  %v154_v51 = vrot.slane %v153_v41, 2 }
  0x4b   :  { %v94_v52 = vrot.slane %v93_v46, 2  ;;  %v107_v53 = vadd.f32 %v106_v47, %v105_v44  ;;  %v120_v54 = vrot.slane %v119_v50, 4  ;;  %v126_v24 = vsel %vm90_vm0, %v89_v45, 0.0 }
  0x4c   :  { %v101_v55 = vrot.slane %v100_v17, 2  ;;  %v114_v56 = vadd.f32 %v113_v49, %v112_v48  ;;  %v127_v57 = vrot.slane %v126_v24, 4  ;;  %v155_v58 = vadd.f32 %v154_v51, %v153_v41 }
  0x4d   :  { %v95_v59 = vadd.f32 %v94_v52, %v93_v46  ;;  %v108_v31 = vrot.slane %v107_v53, 2  ;;  %v121_v60 = vadd.f32 %v120_v54, %v119_v50  ;;  %v161_v61 = vrot.slane %v160_v12, 2 }
  0x4e   :  { %v102_v62 = vadd.f32 %v101_v55, %v100_v17  ;;  %v115_v63 = vrot.slane %v114_v56, 2  ;;  %v128_v0 = vadd.f32 %v127_v57, %v126_v24  ;;  %v156_v1 = vrot.slane %v155_v58, 1 }
  0x4f   :  { %v96_v2 = vrot.slane %v95_v59, 1  ;;  %v109_v3 = vadd.f32 %v108_v31, %v107_v53  ;;  %v122_v4 = vrot.slane %v121_v60, 2  ;;  %v162_v5 = vadd.f32 %v161_v61, %v160_v12 }
  0x50   :  { %v103_v8 = vrot.slane %v102_v62, 1  ;;  %v116_v9 = vadd.f32 %v115_v63, %v114_v56  ;;  %v129_v10 = vrot.slane %v128_v0, 2  ;;  %v157_v15 = vadd.f32 %v156_v1, %v155_v58 }
  0x51   :  { %v97_v11 = vadd.f32 %v96_v2, %v95_v59  ;;  %v110_v13 = vrot.slane %v109_v3, 1  ;;  %v123_v14 = vadd.f32 %v122_v4, %v121_v60  ;;  %v166_v20 = vrot.slane %v165_v37, 4 }
  0x52   :  { %v104_v16 = vadd.f32 %v103_v8, %v102_v62  ;;  %v117_v18 = vrot.slane %v116_v9, 1  ;;  %v130_v19 = vadd.f32 %v129_v10, %v128_v0  ;;  %v163_v23 = vrot.slane %v162_v5, 1 }
  0x53   :  { %v111_v21 = vadd.f32 %v110_v13, %v109_v3  ;;  %v124_v22 = vrot.slane %v123_v14, 1  ;;  %v172_v25 = vsel %vm90_vm0, %v298_v33, 0.0  ;;  %v167_v29 = vadd.f32 %v166_v20, %v165_v37 }
  0x54   :  { %v118_v26 = vadd.f32 %v117_v18, %v116_v9  ;;  %v131_v27 = vrot.slane %v130_v19, 1  ;;  %v140_v28 = vsel %vm139_vm1, %v104_v16, %v97_v11  ;;  %v173_v34 = vrot.slane %v172_v25, 4 }
  0x55   :  { %v125_v30 = vadd.f32 %v124_v22, %v123_v14  ;;  %v142_v32 = vsel %vm141_vm2, %v111_v21, %v140_v28  ;;  %v179_v35 = vsel %vm90_vm0, %v300_v38, 0.0  ;;  %v168_v6 = vrot.slane %v167_v29, 2 }
  0x56   :  { %v132_v36 = vadd.f32 %v131_v27, %v130_v19  ;;  %v144_v39 = vsel %vm143_vm3, %v118_v26, %v142_v32  ;;  %v180_v40 = vrot.slane %v179_v35, 4  ;;  %v164_v7 = vadd.f32 %v163_v23, %v162_v5 }
  0x57   :  { %v146_v41 = vsel %vm145_vm4, %v125_v30, %v144_v39  ;;  %v174_v33 = vadd.f32 %v173_v34, %v172_v25  ;;  %v186_v43 = vsel %vm90_vm0, %v445_v42, 0.0  ;;  %v169_v44 = vadd.f32 %v168_v6, %v167_v29 }
  0x58   :  { %v148_v37 = vsel %vm147_vm5, %v132_v36, %v146_v41  ;;  %v181_v12 = vadd.f32 %v180_v40, %v179_v35  ;;  %v187_v45 = vrot.slane %v186_v43, 4  ;;  %v199_v49 = vsel %vm139_vm1, %v164_v7, %v157_v15 }
  0x59   :  { %150 = vst [vmem:[%s476_s2] sm:$0x3f] %v148_v37  ;;  %v175_v38 = vrot.slane %v174_v33, 2  ;;  %v170_v46 = vrot.slane %v169_v44, 1 }
  0x5a   :  { %v182_v47 = vrot.slane %v181_v12, 2  ;;  %v188_v48 = vadd.f32 %v187_v45, %v186_v43 }
  0x5b   :  { %v176_v17 = vadd.f32 %v175_v38, %v174_v33  ;;  %v171_v50 = vadd.f32 %v170_v46, %v169_v44 }
  0x5c   :  { %v183_v51 = vadd.f32 %v182_v47, %v181_v12  ;;  %v189_v52 = vrot.slane %v188_v48, 2 }
  0x5d   :  { %v177_v42 = vrot.slane %v176_v17, 1  ;;  %v200_v24 = vsel %vm141_vm2, %v171_v50, %v199_v49 }
  0x5e   :  { %v184_v53 = vrot.slane %v183_v51, 1  ;;  %v190_v54 = vadd.f32 %v189_v52, %v188_v48 }
  0x5f   :  { %v178_v55 = vadd.f32 %v177_v42, %v176_v17 }
  0x60   :  { %v185_v56 = vadd.f32 %v184_v53, %v183_v51  ;;  %v191_v57 = vrot.slane %v190_v54, 1 }
  0x61   :  { %v201_v58 = vsel %vm143_vm3, %v178_v55, %v200_v24 }
  0x62   :  { %v192_v59 = vadd.f32 %v191_v57, %v190_v54  ;;  %v202_v31 = vsel %vm145_vm4, %v185_v56, %v201_v58 }
  0x64   :  { %v203_v60 = vsel %vm147_vm5, %v192_v59, %v202_v31 }
  0x65   :  { %205 = vst [vmem:[%s477_s3] sm:$0x3f] %v203_v60 }
  0x66   :  { %273 = vsyncpa [#allocation3], 1 }
  0x67   :  { %274 = vsyncpa [#allocation5], 1 }

</bundles_post_ra>
